<compile_context>
chip_gen: v7x
topology: tpu7x:2x2x1
jax: 0.10.0
libtpu: 0.0.40
codegen_flags: <defaults>
</compile_context>

<pallas_src>
import math
from functools import partial

import jax
import jax.numpy as jnp
from jax import lax
from jax.experimental import pallas as pl
from jax.experimental.pallas import tpu as pltpu


# ---------------------------------------------------------------------------
# Kernel
# ---------------------------------------------------------------------------
def _mlp_patch_kernel(x_ref, w_ref, b_ref, o_ref, *, activation,
                      approximate_gelu, use_bf16_matmul):
    """One row-tile of: act(x @ W_blockdiag + b_tiled).

    x_ref : (TM, W)  folded input rows (W = lane-dense fold width)
    w_ref : (W, W)   block-diagonal weight (W^T tiled on the diagonal)
    b_ref : (1, W)   bias tiled to the folded layout
    o_ref : (TM, W)  output rows
    """
    x = x_ref[...]
    w = w_ref[...]
    if use_bf16_matmul:
        x = x.astype(jnp.bfloat16)
        w = w.astype(jnp.bfloat16)
    # Linear layer on the MXU; always accumulate in f32.
    y = jnp.dot(x, w, preferred_element_type=jnp.float32) + b_ref[...]
    if activation == "gelu":
        if approximate_gelu:
            # tanh-approx GELU: transcendental runs on the EUP slot (cheap).
            y = jax.nn.gelu(y, approximate=True)
        else:
            # Exact erf-based GELU, matching torch.nn.GELU() default.
            y = 0.5 * y * (1.0 + lax.erf(y * (1.0 / math.sqrt(2.0))))
    elif activation == "relu":
        y = jnp.maximum(y, 0.0)
    # TODO(synk): Dropout is identity in eval mode; training-mode masking would
    # need pltpu.prng_* and cannot reproduce torch's RNG stream anyway.
    o_ref[...] = y.astype(o_ref.dtype)


# ---------------------------------------------------------------------------
# Wrapper helpers
# ---------------------------------------------------------------------------
def _cdiv(a, b):
    return -(-a // b)


def _round_up(a, b):
    return _cdiv(a, b) * b


def _round_down(a, b):
    return (a // b) * b


def _mxu_is_256():
    """True on 256x256-MXU generations (v6e / v7x); False on v5e-and-earlier
    or when the device kind cannot be determined."""
    try:
        kind = jax.devices()[0].device_kind.lower()
    except Exception:
        return False
    if any(tag in kind for tag in ("v2", "v3", "v4", "v5")):
        return False
    if any(tag in kind for tag in ("v6", "v7")):
        return True
    return False


def _choose_fold_width(patch_size, wide_mxu):
    base = 256 if wide_mxu else 128
    if base % patch_size == 0:
        return base
    # Keep the output lane-dense (multiple of 128) for odd patch sizes.
    l = (patch_size * 128) // math.gcd(patch_size, 128)
    if l <= 512:
        return l
    # TODO(synk): very odd patch sizes (> 512 lcm) fall back to masked stores.
    return patch_size


def _choose_row_tile(m_wide, tm_target, min_steps=4):
    """Pick (tm, padded_rows). Prefer tm that divides m_wide (no pad copies),
    sublane-aligned, large, but leaving >= min_steps grid steps for 2-TC
    sharding on big inputs."""
    if m_wide <= tm_target:
        return m_wide, m_wide                       # single full-extent block
    cap = min(tm_target, max(8, _round_down(_cdiv(m_wide, min_steps), 8)))
    cap = max(8, _round_down(cap, 8))
    floor = max(8, _round_down(cap // 4, 8))
    d = cap
    while d >= floor:
        if m_wide % d == 0:
            return d, m_wide                        # exact divisor -> no pad
        d -= 8
    return cap, _round_up(m_wide, cap)              # rare: pad a few rows


# ---------------------------------------------------------------------------
# Public entry point
# ---------------------------------------------------------------------------
def mlp_block_patch_size(x, weight, bias, *, activation="gelu",
                         approximate_gelu=False, use_bf16_matmul=False):
    """Apply act(Linear(x)) over the last axis of x (Dropout = identity, eval).

    x      : (..., P)
    weight : (P, P)   as stored by nn.Linear (out_features, in_features)
    bias   : (P,)
    """
    orig_shape = x.shape
    P = orig_shape[-1]
    M = math.prod(orig_shape[:-1])      # static
    total = M * P

    wide_mxu = _mxu_is_256()
    width = _choose_fold_width(P, wide_mxu)
    F = width // P

    # Block-diagonal weight (x @ W^T per P-segment) and tiled bias, built once.
    w_t = weight.astype(jnp.float32).T                        # (P, P)
    w_big = jnp.kron(jnp.eye(F, dtype=w_t.dtype), w_t) if F > 1 else w_t
    b_big = jnp.tile(bias.astype(jnp.float32), F).reshape(1, width)

    # Row tiling: ~2 MiB blocks on v5e/unknown, ~4 MiB on v6e/v7x.
    m_wide = _cdiv(total, width)
    block_bytes_target = (4 if wide_mxu else 2) * (1 << 20)
    tm_target = max(8, block_bytes_target // (width * 4))
    tm, m_rows = _choose_row_tile(m_wide, tm_target)

    padded_total = m_rows * width
    x_flat = x.reshape(-1)
    needs_pad = padded_total != total
    if needs_pad:
        # Only hit when shapes are ragged (total not a multiple of width, or
        # no aligned tile divides the row count) -- one small pad copy.
        x_flat = jnp.pad(x_flat, (0, padded_total - total))
    x2 = x_flat.reshape(m_rows, width)

    # VMEM budget: 2x double-buffered in/out blocks + f32 matmul intermediate
    # + weight/bias, with headroom.
    block_bytes = tm * width * 4
    vmem_est = 5 * block_bytes + 2 * width * width * 4 + (1 << 20)
    vmem_limit = int(min(64 << 20, max(32 << 20, vmem_est)))

    kernel = partial(_mlp_patch_kernel, activation=activation,
                     approximate_gelu=approximate_gelu,
                     use_bf16_matmul=use_bf16_matmul)

    out = pl.pallas_call(
        kernel,
        out_shape=jax.ShapeDtypeStruct((m_rows, width), x.dtype),
        grid_spec=pltpu.PrefetchScalarGridSpec(
            num_scalar_prefetch=0,
            grid=(m_rows // tm,),
            in_specs=[
                pl.BlockSpec((tm, width), lambda i: (i, 0)),      # x row tile
                pl.BlockSpec((width, width), lambda i: (0, 0)),   # block-diag W
                pl.BlockSpec((1, width), lambda i: (0, 0)),       # tiled bias
            ],
            out_specs=pl.BlockSpec((tm, width), lambda i: (i, 0)),
        ),
        compiler_params=pltpu.CompilerParams(
            dimension_semantics=("parallel",),
            vmem_limit_bytes=vmem_limit),
    )(x2, w_big, b_big)

    if needs_pad:
        out = out.reshape(-1)[:total]
    return out.reshape(orig_shape)


# ---------------------------------------------------------------------------
# Demo / correctness check
# ---------------------------------------------------------------------------
if __name__ == "__main__":
    # Small shapes consistent with PatchTSMixer:
    # (batch, channels, num_patches, patch_size)
    B, C, N, P = 2, 4, 16, 16

    key = jax.random.PRNGKey(0)
    kx, kw, kb = jax.random.split(key, 3)

    x = jax.random.normal(kx, (B, C, N, P), dtype=jnp.float32)

    # Deterministic nn.Linear-style init: U(-1/sqrt(in), 1/sqrt(in)).
    bound = 1.0 / math.sqrt(P)
    weight = jax.random.uniform(kw, (P, P), minval=-bound, maxval=bound,
                                dtype=jnp.float32)   # (out, in)
    bias = jax.random.uniform(kb, (P,), minval=-bound, maxval=bound,
                              dtype=jnp.float32)

    y = mlp_block_patch_size(x, weight, bias, activation="gelu")
    y = jax.block_until_ready(y)

    # Reference in plain JAX (exact erf GELU == torch.nn.GELU() default).
    ref = jax.nn.gelu(x @ weight.T + bias, approximate=False)
    assert y.shape == x.shape
    assert jnp.allclose(y, ref, atol=1e-5, rtol=1e-5), "mismatch vs reference"

    print("KERNEL_OK")
</pallas_src>

<mosaic_0001>
module attributes {stable_mosaic.version = 11 : i64} {
  func.func @_mlp_patch_kernel(%arg0: i32, %arg1: memref<16x128xf32, #tpu.memory_space<vmem>>, %arg2: memref<128x128xf32, #tpu.memory_space<vmem>>, %arg3: memref<1x128xf32, #tpu.memory_space<vmem>>, %arg4: memref<16x128xf32, #tpu.memory_space<vmem>>) attributes {dimension_semantics = [#tpu.dimension_semantics<parallel>], iteration_bounds = array<i64: 1>, scalar_prefetch = 0 : i64, scratch_operands = 0 : i64, tpu.core_type = #tpu.core_type<tc>, window_params = [{transform_indices = @transform_0, window_bounds = array<i64: 16, 128>}, {pipeline_mode = #tpu.pipeline_mode<synchronous>, transform_indices = @transform_1, window_bounds = array<i64: 128, 128>}, {pipeline_mode = #tpu.pipeline_mode<synchronous>, transform_indices = @transform_2, window_bounds = array<i64: 1, 128>}, {transform_indices = @transform_3, window_bounds = array<i64: 16, 128>}]} {
    %c0 = arith.constant 0 : index
    %c0_0 = arith.constant 0 : index
    %0 = vector.load %arg1[%c0, %c0_0] : memref<16x128xf32, #tpu.memory_space<vmem>>, vector<16x128xf32>
    %c0_1 = arith.constant 0 : index
    %c0_2 = arith.constant 0 : index
    %1 = vector.load %arg2[%c0_1, %c0_2] : memref<128x128xf32, #tpu.memory_space<vmem>>, vector<128x128xf32>
    %cst = arith.constant dense<0.000000e+00> : vector<16x128xf32>
    %2 = tpu.matmul %0, %1, %cst {dimension_numbers = #tpu.dot_dimension_numbers<[1], [0], [0], [1], [0, 0, 1, 1], [], []>} : vector<16x128xf32>, vector<128x128xf32>, vector<16x128xf32> -> vector<16x128xf32>
    %c0_3 = arith.constant 0 : index
    %c0_4 = arith.constant 0 : index
    %3 = vector.load %arg3[%c0_3, %c0_4] : memref<1x128xf32, #tpu.memory_space<vmem>>, vector<1x128xf32>
    %4 = vector.broadcast %3 : vector<1x128xf32> to vector<16x128xf32>
    %5 = arith.addf %2, %4 : vector<16x128xf32>
    %cst_5 = arith.constant 5.000000e-01 : f32
    %6 = vector.broadcast %cst_5 : f32 to vector<16x128xf32>
    %7 = arith.mulf %6, %5 : vector<16x128xf32>
    %cst_6 = arith.constant 0.707106769 : f32
    %8 = vector.broadcast %cst_6 : f32 to vector<16x128xf32>
    %9 = arith.mulf %5, %8 : vector<16x128xf32>
    %10 = math.erf %9 : vector<16x128xf32>
    %cst_7 = arith.constant 1.000000e+00 : f32
    %11 = vector.broadcast %cst_7 : f32 to vector<16x128xf32>
    %12 = arith.addf %11, %10 : vector<16x128xf32>
    %13 = arith.mulf %7, %12 : vector<16x128xf32>
    %c0_8 = arith.constant 0 : index
    %c0_9 = arith.constant 0 : index
    %14 = vector.load %arg4[%c0_8, %c0_9] : memref<16x128xf32, #tpu.memory_space<vmem>>, vector<16x128xf32>
    tpu.vector_store %arg4[%c0_8, %c0_9], %13 {strides = array<i32>} : memref<16x128xf32, #tpu.memory_space<vmem>>, vector<16x128xf32>,
    return
  }
  func.func @transform_0(%arg0: i32) -> (i32, i32) {
    %c0_i32 = arith.constant 0 : i32
    %c0_i32_0 = arith.constant 0 : i32
    return %arg0, %c0_i32 : i32, i32
  }
  func.func @transform_1(%arg0: i32) -> (i32, i32) {
    %c0_i32 = arith.constant 0 : i32
    %c0_i32_0 = arith.constant 0 : i32
    %c0_i32_1 = arith.constant 0 : i32
    return %c0_i32, %c0_i32_0 : i32, i32
  }
  func.func @transform_2(%arg0: i32) -> (i32, i32) {
    %c0_i32 = arith.constant 0 : i32
    %c0_i32_0 = arith.constant 0 : i32
    %c0_i32_1 = arith.constant 0 : i32
    return %c0_i32, %c0_i32_0 : i32, i32
  }
  func.func @transform_3(%arg0: i32) -> (i32, i32) {
    %c0_i32 = arith.constant 0 : i32
    %c0_i32_0 = arith.constant 0 : i32
    return %arg0, %c0_i32 : i32, i32
  }
}

</mosaic_0001>

<bundles_post_ra>
// kernel: tpu_custom_call.1
= control target key start
LH: loop header
LB: loop body
LE: loop exit
PB: predicated region body
PF: predicated region fallthrough
CT: control target
= control target key end

     0   :  { %8 = vsyncpa [#allocation3], 0  ;;  %s413_s0 = inlined_call_operand.hbm [shape: f32[16,128], index: 0, kind: input, shape index: {}]   ;;  %s414_s1 = inlined_call_operand.hbm [shape: f32[128,128], index: 1, kind: input, shape index: {}]   ;;  %s415_s2 = inlined_call_operand.vmem [shape: f32[1,128], index: 2, kind: input, shape index: {}]   ;;  %s416_s3 = inlined_call_operand.hbm [shape: f32[16,128], index: 3, kind: output, shape index: {}]  }
   0x1   :  { %9 = vsyncpa [#allocation6], 0 }
   0x2   :  { %10 = vsyncpa [#allocation4], 0  ;;  %s340_s12 = smov [#allocation2]   ;;  %s268_s16 = scalar_lea.hbm %s413_s0, 256 }
   0x3   :  { %s16_s13 = sshll.u32 %s340_s12, 4  ;;  %p269_p0 = scmp.ne.s32.totalorder %s413_s0, %s268_s16  ;;  %s17_s13 = int_to_ptr.vmem [resolvable:$true] %s16_s13 }
   0x4   :  { %p272_p1 = scmp.lt.u32.totalorder %s268_s16, %s413_s0 }
   0x6   :  { %p274_p2 = pnand %p272_p1, %p269_p0 }
   0x8   :  { %277 = shalt.err (!%p274_p2)
}
   0x9   :  { %s278_s21 = scalar_lea.vmem %s17_s13, 256  ;;  %p283_p4 = scmp.lt.s32.totalorder %s17_s13, %s17_s13 }
   0xa   :  { %p279_p3 = scmp.ne.s32.totalorder %s17_s13, %s278_s21  ;;  %p284_p5 = scmp.lt.s32.totalorder %s278_s21, %s278_s21 }
   0xc   :  { %p285_p6 = por %p284_p5, %p283_p4 }
   0xe   :  { %p286_p7 = pnand %p285_p6, %p279_p3 }
  0x10   :  { %289 = shalt.err (!%p286_p7)
}
  0x11   :  { %s341_s22 = smov 128   ;;  %s342_s23 = smov 8  }
  0x12   :  { %22 = dma.hbm_to_vmem [thread:$0]  %s413_s0, 256, %s17_s13, [#allocation3], %s341_s22, %s341_s22, %s342_s23  }
  0x13   :  { %s343_s26 = smov [#allocation5]   ;;  %s290_s30 = scalar_lea.hbm %s414_s1, 2048 }
  0x14   :  { %s28_s27 = sshll.u32 %s343_s26, 4  ;;  %p291_p8 = scmp.ne.s32.totalorder %s414_s1, %s290_s30  ;;  %s29_s27 = int_to_ptr.vmem [resolvable:$true] %s28_s27 }
  0x15   :  { %p294_p9 = scmp.lt.u32.totalorder %s290_s30, %s414_s1 }
  0x17   :  { %p296_p10 = pnand %p294_p9, %p291_p8 }
  0x19   :  { %299 = shalt.err (!%p296_p10)
}
  0x1a   :  { %s300_s8 = scalar_lea.vmem %s29_s27, 2048  ;;  %p305_p12 = scmp.lt.s32.totalorder %s29_s27, %s29_s27 }
  0x1b   :  { %p301_p11 = scmp.ne.s32.totalorder %s29_s27, %s300_s8  ;;  %p306_p13 = scmp.lt.s32.totalorder %s300_s8, %s300_s8 }
  0x1d   :  { %p307_p0 = por %p306_p13, %p305_p12 }
  0x1f   :  { %p308_p1 = pnand %p307_p0, %p301_p11 }
  0x21   :  { %311 = shalt.err (!%p308_p1)
}
  0x22   :  { %34 = dma.hbm_to_vmem [thread:$0]  %s414_s1, 2048, %s29_s27, [#allocation6], %s341_s22, %s341_s22, %s342_s23  }
  0x23   :  { %334 = dma.done.wait [#allocation3], 256  }
  0x24   :  { %335 = vsyncadd [#allocation3], 4294967040 }
  0x25   :  { %336 = dma.done.wait [#allocation6], 2048  }
  0x26   :  { %337 = vsyncadd [#allocation6], 4294965248  ;;  %v45_v0 = vld [vmem:[#allocation5] sm:$0xff]  ;;  %v46_v1 = vld [vmem:[#allocation5 + $0x8] sm:$0xff]  ;;  %s344_s11 = smov [#allocation7]  }
  0x27   :  { %v47_v2 = vld [vmem:[#allocation5 + $0x10] sm:$0xff]  ;;  %v227_v3 = vpack.c.bf16 %v46_v1, %v45_v0  ;;  %v48_v4 = vld [vmem:[#allocation5 + $0x18] sm:$0xff]  ;;  %v49_v6 = vld [vmem:[#allocation5 + $0x20] sm:$0xff]  ;;  %s160_s12 = sshll.u32 %s344_s11, 4  ;;  %s161_s12 = int_to_ptr.vmem [resolvable:$true] %s160_s12 }
  0x28   :  { %v231_v5 = vpack.c.bf16 %v48_v4, %v47_v2  ;;  %v50_v7 = vld [vmem:[#allocation5 + $0x28] sm:$0xff]  ;;  %v43_v9 = vld [vmem:[#allocation2] sm:$0xff]  ;;  %v52_v11 = vld [vmem:[#allocation5 + $0x38] sm:$0xff]  ;;  %p317_p3 = scmp.lt.s32.totalorder %s161_s12, %s161_s12 }
  0x29   :  { %228 = vmatprep.subr.bf16.mxu0 %v227_v3  ;;  %v235_v8 = vpack.c.bf16 %v50_v7, %v49_v6  ;;  %v51_v10 = vld [vmem:[#allocation5 + $0x30] sm:$0xff]  ;;  %224 = vmatprep.mubr.f32.mxu0 %v43_v9  ;;  %v53_v13 = vld [vmem:[#allocation5 + $0x40] sm:$0xff]  ;;  %v54_v14 = vld [vmem:[#allocation5 + $0x48] sm:$0xff] }
  0x2a   :  { %230 = vmatpush3.bf16.msra.mxu0 %v227_v3  ;;  %v239_v12 = vpack.c.bf16 %v52_v11, %v51_v10  ;;  %v243_v15 = vpack.c.bf16 %v54_v14, %v53_v13  ;;  %v55_v16 = vld [vmem:[#allocation5 + $0x50] sm:$0xff]  ;;  %v56_v17 = vld [vmem:[#allocation5 + $0x58] sm:$0xff]  ;;  %v57_v19 = vld [vmem:[#allocation5 + $0x60] sm:$0xff] }
  0x2b   :  { %232 = vmatprep.subr.bf16.mxu0 %v231_v5  ;;  %v247_v18 = vpack.c.bf16 %v56_v17, %v55_v16  ;;  %v58_v20 = vld [vmem:[#allocation5 + $0x68] sm:$0xff]  ;;  %v59_v22 = vld [vmem:[#allocation5 + $0x70] sm:$0xff]  ;;  %v60_v23 = vld [vmem:[#allocation5 + $0x78] sm:$0xff] }
  0x2c   :  { %v251_v21 = vpack.c.bf16 %v58_v20, %v57_v19  ;;  %v255_v24 = vpack.c.bf16 %v60_v23, %v59_v22  ;;  %v44_v25 = vld [vmem:[#allocation2 + $0x8] sm:$0xff]  ;;  %v173_v26 = vld [vmem:[%s415_s2] ss:$0 sm:$0xff]  ;;  %s312_s2 = scalar_lea.vmem %s161_s12, 256 }
  0x2d   :  { %p313_p2 = scmp.ne.s32.totalorder %s161_s12, %s312_s2  ;;  %p318_p4 = scmp.lt.s32.totalorder %s312_s2, %s312_s2 }
  0x2e   :  { %234 = vmatpush3.bf16.msra.mxu0 %v231_v5 }
  0x2f   :  { %236 = vmatprep.subr.bf16.mxu0 %v235_v8  ;;  %p319_p5 = por %p318_p4, %p317_p3 }
  0x31   :  { %p320_p6 = pnand %p319_p5, %p313_p2 }
  0x32   :  { %238 = vmatpush3.bf16.msra.mxu0 %v235_v8 }
  0x33   :  { %240 = vmatprep.subr.bf16.mxu0 %v239_v12 }
  0x36   :  { %242 = vmatpush3.bf16.msra.mxu0 %v239_v12 }
  0x37   :  { %244 = vmatprep.subr.bf16.mxu0 %v243_v15 }
  0x3a   :  { %246 = vmatpush3.bf16.msra.mxu0 %v243_v15 }
  0x3b   :  { %248 = vmatprep.subr.bf16.mxu0 %v247_v18 }
  0x3e   :  { %250 = vmatpush3.bf16.msra.mxu0 %v247_v18 }
  0x3f   :  { %252 = vmatprep.subr.bf16.mxu0 %v251_v21 }
  0x42   :  { %254 = vmatpush3.bf16.msra.mxu0 %v251_v21 }
  0x43   :  { %256 = vmatprep.subr.bf16.mxu0 %v255_v24 }
  0x46   :  { %258 = vmatpush3.bf16.msra.mxu0 %v255_v24 }
  0x49   :  { %225 = vmatmul.mubr.f32.vlgmr.msra.gmra.mrb[0].mxu0 %v44_v25 }
 0x11c   :  { %v226_v27 = vpop.f32.mrb[0].mxu0 }
 0x11d   :  { %v140_v28 = vadd.f32 %v226_v27, %v173_v26  ;;  %v134_v29 = vpop.f32.mrb[1].mxu0 }
 0x11e   :  { %v135_v30 = vadd.f32 %v173_v26, %v134_v29 }
 0x11f   :  { %v146_v31 = vmul.f32 0.70710677, %v140_v28  ;;  %v144_v35 = vmul.f32 0.5, %v140_v28 }
 0x120   :  { %v145_v32 = vmul.f32 0.70710677, %v135_v30  ;;  %v143_v37 = vmul.f32 0.5, %v135_v30 }
 0x121   :  { %264 = verf.f32 %v146_v31 }
 0x122   :  { %266 = verf.f32 %v145_v32 }
 0x12b   :  { %v265_v33 = vpop.eup %264 }
 0x12c   :  { %v267_v34 = vpop.eup %266  ;;  %v150_v36 = vadd.f32 1.0, %v265_v33 }
 0x12d   :  { %v149_v38 = vadd.f32 1.0, %v267_v34 }
 0x12e   :  { %v152_v39 = vmul.f32 %v150_v36, %v144_v35 }
 0x12f   :  { %v151_v40 = vmul.f32 %v149_v38, %v143_v37 }
 0x130   :  { %154 = vst [vmem:[#allocation7 + $0x8] sm:$0xff] %v152_v39 }
 0x131   :  { %153 = vst [vmem:[#allocation7] sm:$0xff] %v151_v40 }
 0x132   :  { %323 = shalt.err (!%p320_p6)
}
 0x133   :  { %s324_s15 = scalar_lea.hbm %s416_s3, 256 }
 0x134   :  { %p325_p7 = scmp.ne.s32.totalorder %s416_s3, %s324_s15  ;;  %p328_p8 = scmp.lt.u32.totalorder %s324_s15, %s416_s3 }
 0x136   :  { %p330_p9 = pnand %p328_p8, %p325_p7 }
 0x138   :  { %333 = shalt.err (!%p330_p9)
}
 0x139   :  { %166 = dma.vmem_to_hbm [thread:$0]  %s161_s12, 256, %s416_s3, [#allocation4], %s341_s22, %s341_s22, %s342_s23  }
 0x13a   :  { %338 = dma.done.wait [#allocation4], 256  }
 0x13b   :  { %339 = vsyncadd [#allocation4], 4294967040 }
 0x13c   :  { %170 = vsyncpa [#allocation3], 1 }
 0x13d   :  { %171 = vsyncpa [#allocation6], 1 }
 0x13e   :  { %172 = vsyncpa [#allocation4], 1 }

</bundles_post_ra>
